<compile_context>
chip_gen: v7x
topology: tpu7x:2x2x1
jax: 0.10.0
libtpu: 0.0.40
codegen_flags: <defaults>
</compile_context>

<pallas_src>
import functools

import jax
import jax.numpy as jnp
from jax.experimental import pallas as pl
from jax.experimental.pallas import tpu as pltpu


def _round_up(x, m):
    return -(-x // m) * m


def _swiglu_kernel(a_ref, g_ref, o_ref):
    # a_ref, g_ref, o_ref: (tn, t_half, t_hw) VMEM blocks; lane dim = spatial.
    a = a_ref[...].astype(jnp.float32)
    g = g_ref[...].astype(jnp.float32)
    sig = 1.0 / (1.0 + jnp.exp(-g))          # exp -> EUP; saturates correctly
    o_ref[...] = (a * sig).astype(o_ref.dtype)


@functools.partial(jax.jit, static_argnames=("target_block_bytes",))
def swiglu(x, *, target_block_bytes=2 << 20):
    """SwiGLU over dim=1 of an NCHW tensor: a, b = split(x, 2, dim=1); a*sigmoid(b)."""
    assert x.ndim == 4, "expects NCHW input"
    n, c, h, w = x.shape
    assert c % 2 == 0, "channel dim must be even for SwiGLU"
    half = c // 2
    hw = h * w
    itemsize = jnp.dtype(x.dtype).itemsize

    # Lane-dense view: each sample's a-half and gate-half become contiguous
    # (half, H*W) slabs. Pure metadata reshape of the contiguous NCHW array.
    x4 = x.reshape(n, 2, half, hw)

    # ---- tile selection: bounded, (8,128)-friendly blocks ----
    # Lane (last) dim: as wide as possible; full extent or a multiple of 128.
    lane_cap = max(128, (target_block_bytes // (8 * itemsize)) // 128 * 128)
    if _round_up(hw, 128) <= lane_cap:
        t_hw = hw                      # full extent (always a legal block dim)
    else:
        t_hw = lane_cap                # 128-multiple
    t_hw_pad = _round_up(t_hw, 128)

    # Sublane (second-to-last) dim: channel half; full extent or multiple of 8.
    sub_cap = max(8, (target_block_bytes // (t_hw_pad * itemsize)) // 8 * 8)
    if _round_up(half, 8) <= sub_cap:
        t_half = half
    else:
        t_half = sub_cap
    t_half_pad = _round_up(t_half, 8)

    # Batch (leading) dim: soak up the remaining block budget.
    slab_bytes = t_half_pad * t_hw_pad * itemsize
    tn = int(max(1, min(n, target_block_bytes // max(slab_bytes, 1))))

    grid = (pl.cdiv(n, tn), pl.cdiv(half, t_half), pl.cdiv(hw, t_hw))

    block_bytes = tn * slab_bytes
    # a + gate + out blocks, double-buffered, plus headroom; capped well below
    # v7x's 64 MiB physical VMEM per TensorCore.
    vmem_limit = int(min(max(8 * block_bytes + (2 << 20), 8 << 20), 36 << 20))

    n_out = n * half * hw
    cost = pl.CostEstimate(
        flops=3 * n_out,                      # negate, add, multiply per elem
        transcendentals=n_out,                # one exp per output element
        bytes_accessed=3 * n_out * itemsize,  # read a + gate, write out
    )

    out = pl.pallas_call(
        _swiglu_kernel,
        out_shape=jax.ShapeDtypeStruct((n, half, hw), x.dtype),
        grid_spec=pltpu.PrefetchScalarGridSpec(
            num_scalar_prefetch=0,
            grid=grid,
            in_specs=[
                # Same array passed twice; only the squeezed half-index differs.
                pl.BlockSpec((tn, None, t_half, t_hw),
                             lambda i, c_, j: (i, 0, c_, j)),   # a-half
                pl.BlockSpec((tn, None, t_half, t_hw),
                             lambda i, c_, j: (i, 1, c_, j)),   # gate-half
            ],
            out_specs=pl.BlockSpec((tn, t_half, t_hw),
                                   lambda i, c_, j: (i, c_, j)),
        ),
        compiler_params=pltpu.CompilerParams(
            dimension_semantics=("parallel", "parallel", "parallel"),
            vmem_limit_bytes=vmem_limit,
        ),
        cost_estimate=cost,
    )(x4, x4)

    return out.reshape(n, half, h, w)


def _reference(x):
    half = x.shape[1] // 2
    a, b = x[:, :half], x[:, half:]
    return a * jax.nn.sigmoid(b)


if __name__ == "__main__":
    # Small shapes consistent with the module's use inside a CNN (dim=1 split).
    N, C, H, W = 2, 4, 16, 16
    key = jax.random.PRNGKey(0)
    x = jax.random.normal(key, (N, C, H, W), dtype=jnp.float32)

    out = swiglu(x)
    out = jax.block_until_ready(out)

    ref = _reference(x)
    assert out.shape == (N, C // 2, H, W), out.shape
    assert jnp.allclose(out, ref, atol=1e-5, rtol=1e-5), \
        float(jnp.max(jnp.abs(out - ref)))

    print("KERNEL_OK")
</pallas_src>

<mosaic_0001>
module attributes {stable_mosaic.version = 11 : i64} {
  func.func @_swiglu_kernel(%arg0: i32, %arg1: i32, %arg2: i32, %arg3: memref<2x1x2x256xf32, #tpu.memory_space<vmem>>, %arg4: memref<2x1x2x256xf32, #tpu.memory_space<vmem>>, %arg5: memref<2x2x256xf32, #tpu.memory_space<vmem>>) attributes {dimension_semantics = [#tpu.dimension_semantics<parallel>, #tpu.dimension_semantics<parallel>, #tpu.dimension_semantics<parallel>], iteration_bounds = array<i64: 1, 1, 1>, scalar_prefetch = 0 : i64, scratch_operands = 0 : i64, tpu.core_type = #tpu.core_type<tc>, window_params = [{transform_indices = @transform_0, window_bounds = array<i64: 2, 1, 2, 256>}, {transform_indices = @transform_1, window_bounds = array<i64: 2, 1, 2, 256>}, {transform_indices = @transform_2, window_bounds = array<i64: 2, 2, 256>}]} {
    %c0 = arith.constant 0 : index
    %c0_0 = arith.constant 0 : index
    %c0_1 = arith.constant 0 : index
    %c0_2 = arith.constant 0 : index
    %0 = vector.load %arg3[%c0, %c0_0, %c0_1, %c0_2] : memref<2x1x2x256xf32, #tpu.memory_space<vmem>>, vector<2x1x2x256xf32>
    %1 = vector.shape_cast %0 : vector<2x1x2x256xf32> to vector<2x2x256xf32>
    %c0_3 = arith.constant 0 : index
    %c0_4 = arith.constant 0 : index
    %c0_5 = arith.constant 0 : index
    %c0_6 = arith.constant 0 : index
    %2 = vector.load %arg4[%c0_3, %c0_4, %c0_5, %c0_6] : memref<2x1x2x256xf32, #tpu.memory_space<vmem>>, vector<2x1x2x256xf32>
    %3 = vector.shape_cast %2 : vector<2x1x2x256xf32> to vector<2x2x256xf32>
    %cst = arith.constant 0.000000e+00 : f32
    %4 = vector.broadcast %cst : f32 to vector<2x2x256xf32>
    %5 = arith.subf %4, %3 : vector<2x2x256xf32>
    %6 = math.exp %5 : vector<2x2x256xf32>
    %cst_7 = arith.constant 1.000000e+00 : f32
    %7 = vector.broadcast %cst_7 : f32 to vector<2x2x256xf32>
    %8 = arith.addf %7, %6 : vector<2x2x256xf32>
    %cst_8 = arith.constant 1.000000e+00 : f32
    %9 = vector.broadcast %cst_8 : f32 to vector<2x2x256xf32>
    %10 = arith.divf %9, %8 : vector<2x2x256xf32>
    %11 = arith.mulf %1, %10 : vector<2x2x256xf32>
    %c0_9 = arith.constant 0 : index
    %c0_10 = arith.constant 0 : index
    %c0_11 = arith.constant 0 : index
    %12 = vector.load %arg5[%c0_9, %c0_10, %c0_11] : memref<2x2x256xf32, #tpu.memory_space<vmem>>, vector<2x2x256xf32>
    tpu.vector_store %arg5[%c0_9, %c0_10, %c0_11], %11 {strides = array<i32>} : memref<2x2x256xf32, #tpu.memory_space<vmem>>, vector<2x2x256xf32>,
    return
  }
  func.func @transform_0(%arg0: i32, %arg1: i32, %arg2: i32) -> (i32, i32, i32, i32) {
    %c0_i32 = arith.constant 0 : i32
    %c0_i32_0 = arith.constant 0 : i32
    return %arg0, %c0_i32, %arg1, %arg2 : i32, i32, i32, i32
  }
  func.func @transform_1(%arg0: i32, %arg1: i32, %arg2: i32) -> (i32, i32, i32, i32) {
    %c1_i32 = arith.constant 1 : i32
    %c0_i32 = arith.constant 0 : i32
    return %arg0, %c1_i32, %arg1, %arg2 : i32, i32, i32, i32
  }
  func.func @transform_2(%arg0: i32, %arg1: i32, %arg2: i32) -> (i32, i32, i32) {
    %c0_i32 = arith.constant 0 : i32
    return %arg0, %arg1, %arg2 : i32, i32, i32
  }
}

</mosaic_0001>

<bundles_post_ra>
// kernel: swiglu.1
= control target key start
LH: loop header
LB: loop body
LE: loop exit
PB: predicated region body
PF: predicated region fallthrough
CT: control target
= control target key end

     0   :  { %s177_s0 = inlined_call_operand.vmem [shape: f32[2,2,2,256], index: 0, kind: input, shape index: {}, may-alias: {0,1}]   ;;  %s178_s1 = inlined_call_operand.vmem [shape: f32[2,2,2,256], index: 1, kind: input, shape index: {}, may-alias: {0,1}]   ;;  %s179_s2 = inlined_call_operand.vmem [shape: f32[2,2,256], index: 2, kind: output, shape index: {}]  }
   0x1   :  { %v134_v0 = vld [vmem:[%s178_s1 + $0x4] sm:$0xf]  ;;  %v135_v1 = vld [vmem:[%s178_s1 + $0xc] sm:$0xf]  ;;  %v24_v2 = vld [vmem:[%s177_s0] sm:$0xf] }
   0x2   :  { %71 = vst [vmem:[#allocation3] sm:$0xf] %v134_v0  ;;  %73 = vst [vmem:[#allocation3 + $0x4] sm:$0xf] %v135_v1  ;;  %v26_v3 = vld [vmem:[%s177_s0 + $0x8] sm:$0xf] }
   0x3   :  { %25 = vst [vmem:[#allocation2] sm:$0xf] %v24_v2  ;;  %27 = vst [vmem:[#allocation2 + $0x4] sm:$0xf] %v26_v3 }
   0x9   :  { %v104_v4 = vld [vmem:[#allocation3] sm:$0xf]  ;;  %v105_v5 = vld [vmem:[#allocation3 + $0x4] sm:$0xf] }
   0xa   :  { %v106_v6 = vsub.f32 0.0, %v104_v4  ;;  %v107_v7 = vsub.f32 0.0, %v105_v5  ;;  %v102_v14 = vld [vmem:[#allocation2] sm:$0xf]  ;;  %v103_v15 = vld [vmem:[#allocation2 + $0x4] sm:$0xf] }
   0xc   :  { %v108_v8 = vmul.f32 1.442695, %v106_v6  ;;  %v110_v9 = vmul.f32 1.442695, %v107_v7 }
   0xe   :  { %136 = vpow2.f32 %v108_v8 }
   0xf   :  { %138 = vpow2.f32 %v110_v9 }
  0x18   :  { %v137_v10 = vpop.eup %136 }
  0x19   :  { %v139_v11 = vpop.eup %138  ;;  %v112_v12 = vadd.f32 1.0, %v137_v10 }
  0x1a   :  { %v113_v13 = vadd.f32 1.0, %v139_v11 }
  0x1b   :  { %140 = vrcp.f32 %v112_v12 }
  0x1c   :  { %142 = vrcp.f32 %v113_v13 }
  0x25   :  { %v141_v16 = vpop.eup %140 }
  0x26   :  { %v143_v17 = vpop.eup %142  ;;  %v118_v18 = vmul.f32 %v141_v16, %v102_v14 }
  0x27   :  { %v119_v19 = vmul.f32 %v143_v17, %v103_v15 }
  0x28   :  { %120 = vst [vmem:[%s179_s2] sm:$0xf] %v118_v18 }
  0x29   :  { %121 = vst [vmem:[%s179_s2 + $0x4] sm:$0xf] %v119_v19 }

</bundles_post_ra>
